<compile_context>
chip_gen: v6e
topology: v6e:2x2x1
jax: 0.10.0
libtpu: 0.0.40
codegen_flags: <defaults>
</compile_context>

<pallas_src>
import functools
import math

import jax
import jax.numpy as jnp
from jax.experimental import pallas as pl
from jax.experimental.pallas import tpu as pltpu

LANES = 128
SUBLANES = 8

# Fused path budget, measured in f32-EXPANDED bytes (covers the in-kernel
# upcast temporary as well as the native input), kept well under the v5e
# scoped default once doubled for native+temp.
_FUSED_F32_BUDGET_BYTES = 12 * 1024 * 1024
_FUSED_VMEM_LIMIT_BYTES = 32 * 1024 * 1024

# Tiled fallback: ~4 MiB native per block (dtype-scaled row count), double
# buffered by the pipeline; explicit vmem limit leaves headroom for the f32
# upcast temporaries.
_TILED_BLOCK_TARGET_BYTES = 4 * 1024 * 1024
_TILED_VMEM_LIMIT_BYTES = 48 * 1024 * 1024


# ---------------------------------------------------------------------------
# Host-side slab building
# ---------------------------------------------------------------------------
def _to_lane_slab(w):
    """Flatten + zero-pad one weight to a lane-dense (rows, 128) slab."""
    flat = w.reshape(-1)
    pad = (-flat.shape[0]) % LANES
    if pad:
        flat = jnp.pad(flat, (0, pad))
    return flat.reshape(-1, LANES)


def _build_dtype_slabs(weights):
    """One concatenated (rows, 128) slab per dtype, rows a multiple of 8.

    One flatten/concat/pad/reshape total per dtype group (instead of one per
    weight). Zero padding is neutral for a sum-of-squares.
    """
    groups = {}
    for w in weights:
        groups.setdefault(jnp.dtype(w.dtype), []).append(w.reshape(-1))
    slabs = []
    for _, flats in groups.items():
        flat = flats[0] if len(flats) == 1 else jnp.concatenate(flats)
        pad = (-flat.shape[0]) % (SUBLANES * LANES)
        if pad:
            flat = jnp.pad(flat, (0, pad))
        slabs.append(flat.reshape(-1, LANES))
    return slabs


# ---------------------------------------------------------------------------
# Fused path: ONE pallas_call -> final loss scalar.
#   inputs:  criterion (SMEM (1,1)), extra_ssq (SMEM (1,1)), per-dtype slabs
#   output:  loss (SMEM (1,1))
# ---------------------------------------------------------------------------
def _make_fused_loss_kernel(n_slabs, half_weight_decay):
    half_wd = float(half_weight_decay)

    def kernel(*refs):
        crit_ref = refs[0]
        extra_ref = refs[1]
        slab_refs = refs[2:2 + n_slabs]
        o_ref = refs[2 + n_slabs]

        # Fold everything into one (8,128) f32 vector accumulator: the
        # reshape keeps the (8,128) hw tile, so the axis-0 sum is plain
        # vreg-wise VPU adds (no per-weight XLU reduce chains).
        acc = jnp.zeros((SUBLANES, LANES), jnp.float32)
        for ref in slab_refs:                       # static unroll, <= #dtypes
            x = ref[...].astype(jnp.float32)
            acc = acc + jnp.sum((x * x).reshape(-1, SUBLANES, LANES), axis=0)

        ssq = jnp.sum(acc) + extra_ref[0, 0]        # single XLU reduce
        o_ref[0, 0] = crit_ref[0, 0] + half_wd * ssq

    return kernel


def _fused_loss_call(criterion, extra_ssq, slabs, half_wd):
    n = len(slabs)
    crit = jnp.asarray(criterion, jnp.float32).reshape(1, 1)
    extra = jnp.asarray(extra_ssq, jnp.float32).reshape(1, 1)
    out = pl.pallas_call(
        _make_fused_loss_kernel(n, half_wd),
        out_shape=jax.ShapeDtypeStruct((1, 1), jnp.float32),
        in_specs=([pl.BlockSpec(memory_space=pltpu.SMEM)] * 2
                  + [pl.BlockSpec(memory_space=pltpu.VMEM)] * n),
        out_specs=pl.BlockSpec(memory_space=pltpu.SMEM),
        compiler_params=pltpu.CompilerParams(
            vmem_limit_bytes=_FUSED_VMEM_LIMIT_BYTES),
    )(crit, extra, *slabs)
    return out[0, 0]


# ---------------------------------------------------------------------------
# Per-weight sum-of-squares (debug / flag=True path): one call, n small slabs,
# one SMEM scalar per weight.
# ---------------------------------------------------------------------------
def _make_per_weight_ssq_kernel(n):
    def kernel(*refs):
        o_ref = refs[n]                             # (n, 1) SMEM output
        for i in range(n):                          # static unroll
            x = refs[i][...].astype(jnp.float32)
            o_ref[i, 0] = jnp.sum(x * x)
    return kernel


def _per_weight_ssq_call(slabs):
    n = len(slabs)
    out = pl.pallas_call(
        _make_per_weight_ssq_kernel(n),
        out_shape=jax.ShapeDtypeStruct((n, 1), jnp.float32),
        in_specs=[pl.BlockSpec(memory_space=pltpu.VMEM)] * n,
        out_specs=pl.BlockSpec(memory_space=pltpu.SMEM),
        compiler_params=pltpu.CompilerParams(
            vmem_limit_bytes=_FUSED_VMEM_LIMIT_BYTES),
    )(*slabs)
    return out[:, 0]


# ---------------------------------------------------------------------------
# Tiled fallback for weights too large to sit whole in VMEM.
# Grid = (2, blocks_per_core): outer axis is "parallel" (both TensorCores on
# v7x; plain sequential split on v5e/v6e), inner axis is the reduction.
# ---------------------------------------------------------------------------
def _tiled_ssq_kernel(x_ref, o_ref, acc_ref):
    @pl.when(pl.program_id(1) == 0)
    def _():
        acc_ref[...] = jnp.zeros_like(acc_ref)

    x = x_ref[...].astype(jnp.float32)
    # Per-step work stays on the VPU: fold into the (8,128) accumulator,
    # defer all cross-lane/sublane (XLU) reduction to the epilogue.
    acc_ref[...] += jnp.sum((x * x).reshape(-1, SUBLANES, LANES), axis=0)

    @pl.when(pl.program_id(1) == pl.num_programs(1) - 1)
    def _():
        o_ref[0, 0] = jnp.sum(acc_ref[...])         # single final reduce


def _tiled_ssq_call(w, rows_per_block=None):
    dt = jnp.dtype(w.dtype)
    if rows_per_block is None:
        rows_per_block = _TILED_BLOCK_TARGET_BYTES // (LANES * dt.itemsize)
        rows_per_block = max(SUBLANES, (rows_per_block // SUBLANES) * SUBLANES)

    flat = w.reshape(-1)
    chunk = rows_per_block * LANES
    n_blocks = (flat.shape[0] + chunk - 1) // chunk
    n_blocks += n_blocks % 2                        # even split across 2 cores
    pad = n_blocks * chunk - flat.shape[0]
    if pad:
        flat = jnp.pad(flat, (0, pad))              # zeros: neutral for ssq
    x2d = flat.reshape(-1, LANES)
    blocks_per_core = n_blocks // 2

    out = pl.pallas_call(
        _tiled_ssq_kernel,
        out_shape=jax.ShapeDtypeStruct((2, 1), jnp.float32),
        grid_spec=pltpu.PrefetchScalarGridSpec(
            num_scalar_prefetch=0,
            grid=(2, blocks_per_core),
            in_specs=[pl.BlockSpec(
                (rows_per_block, LANES),
                lambda c, k: (c * blocks_per_core + k, 0))],
            out_specs=pl.BlockSpec((1, 1), lambda c, k: (c, 0),
                                   memory_space=pltpu.SMEM),
            scratch_shapes=[pltpu.VMEM((SUBLANES, LANES), jnp.float32)],
        ),
        compiler_params=pltpu.CompilerParams(
            dimension_semantics=("parallel", "arbitrary"),
            vmem_limit_bytes=_TILED_VMEM_LIMIT_BYTES),
    )(x2d)
    return out[0, 0] + out[1, 0]


# ---------------------------------------------------------------------------
# Public wrapper mimicking the PyTorch module's forward().
# ---------------------------------------------------------------------------
def loss_with_l2_regularization(criterion, named_params, weight_decay=1e-5,
                                flag=False):
    """criterion: scalar loss; named_params: dict {name: array}."""
    conv_items = [(k, v) for k, v in named_params.items()
                  if 'conv' in k and 'weight' in k]
    criterion = jnp.asarray(criterion, jnp.float32)
    if not conv_items:
        return criterion

    half_wd = float(weight_decay) * 0.5

    # Partition weights: everything that fits the fused f32-expanded budget
    # goes into the single fused call; (rare) overflow -> tiled grid reduction.
    fused, tiled = [], []
    remaining = _FUSED_F32_BUDGET_BYTES
    for k, w in conv_items:
        f32_bytes = 4 * int(math.prod(w.shape))
        if f32_bytes <= remaining:
            fused.append((k, w))
            remaining -= f32_bytes
        else:
            tiled.append((k, w))

    if flag:
        # Debug path: per-weight penalties, printed jit-safely.
        ssqs = {}
        if fused:
            vals = _per_weight_ssq_call([_to_lane_slab(w) for _, w in fused])
            for i, (k, _) in enumerate(fused):
                ssqs[k] = vals[i]
        for k, w in tiled:
            ssqs[k] = _tiled_ssq_call(w)
        reg = jnp.float32(0.0)
        for k, _ in conv_items:
            penality = half_wd * ssqs[k]
            jax.debug.print(k + " : {}", penality)
            reg = reg + penality
        return criterion + reg

    # Fast path: one fused pallas_call emits the final loss.
    tiled_ssqs = [_tiled_ssq_call(w) for _, w in tiled]
    extra_ssq = sum(tiled_ssqs) if tiled_ssqs else jnp.float32(0.0)
    slabs = _build_dtype_slabs([w for _, w in fused]) if fused else []
    return _fused_loss_call(criterion, extra_ssq, slabs, half_wd)


# ---------------------------------------------------------------------------
# Example / self-test
# ---------------------------------------------------------------------------
def init_drpnn_like_params(key, spectral_num=4, channels=8, ksize=3):
    """Deterministic synthetic parameters shaped like a small DRPNN."""
    ks = jax.random.split(key, 8)
    p = {}
    # conv weights (OIHW) -- picked up by the regularizer
    p['conv_0.weight'] = 0.1 * jax.random.normal(
        ks[0], (channels, spectral_num + 1, ksize, ksize), jnp.float32)
    p['conv_1.weight'] = 0.1 * jax.random.normal(
        ks[1], (channels, channels, ksize, ksize), jnp.float32)
    p['conv_2.weight'] = (0.1 * jax.random.normal(
        ks[2], (spectral_num + 1, channels, ksize, ksize),
        jnp.float32)).astype(jnp.bfloat16)        # exercise in-kernel cast
    p['conv_3.weight'] = 0.1 * jax.random.normal(
        ks[3], (spectral_num, spectral_num + 1, ksize, ksize), jnp.float32)
    p['conv_4.weight'] = 0.1 * jax.random.normal(
        ks[4], (2 * channels, 2 * channels, 5, 5), jnp.float32)
    # biases / non-conv params -- must be ignored by the regularizer
    p['conv_0.bias'] = jnp.zeros((channels,), jnp.float32)
    p['conv_1.bias'] = jnp.zeros((channels,), jnp.float32)
    p['bn.weight'] = jnp.ones((channels,), jnp.float32)   # 'weight', not 'conv'
    p['fc.weight'] = 0.1 * jax.random.normal(ks[5], (channels, channels),
                                             jnp.float32)  # not 'conv'
    return p


if __name__ == "__main__":
    key = jax.random.PRNGKey(0)
    k_params, k_crit = jax.random.split(key)

    params = init_drpnn_like_params(k_params, spectral_num=4, channels=8,
                                    ksize=3)
    criterion = jnp.abs(jax.random.normal(k_crit, (), jnp.float32))
    weight_decay = 1e-5

    # Jit the whole wrapper so the (single) concat/pad/reshape and the fused
    # pallas_call become one dispatch.
    loss_fn = jax.jit(functools.partial(loss_with_l2_regularization,
                                        weight_decay=weight_decay, flag=False))
    loss = jax.block_until_ready(loss_fn(criterion, params))

    # Pure-JAX reference.
    conv_names = [k for k in params if 'conv' in k and 'weight' in k]
    ref_ssqs = {k: jnp.sum(params[k].astype(jnp.float32) ** 2)
                for k in conv_names}
    ref_reg = sum(weight_decay * (ref_ssqs[k] / 2.0) for k in conv_names)
    ref_loss = criterion + ref_reg
    assert jnp.allclose(loss, ref_loss, rtol=1e-5, atol=1e-6), (loss, ref_loss)

    # Exercise the per-weight kernel (the flag=True path, sans printing).
    vals = jax.block_until_ready(
        _per_weight_ssq_call([_to_lane_slab(params[k]) for k in conv_names]))
    for i, k in enumerate(conv_names):
        assert jnp.allclose(vals[i], ref_ssqs[k], rtol=1e-5, atol=1e-6), k

    # Exercise the tiled fallback (forced small blocks so the grid runs).
    for k in conv_names[:2]:
        s = jax.block_until_ready(_tiled_ssq_call(params[k], rows_per_block=8))
        assert jnp.allclose(s, ref_ssqs[k], rtol=1e-5, atol=1e-6), k

    print("KERNEL_OK")
</pallas_src>

<mosaic_0001>
module attributes {stable_mosaic.version = 11 : i64} {
  func.func @kernel(%arg0: memref<1x1xf32, #tpu.memory_space<smem>>, %arg1: memref<1x1xf32, #tpu.memory_space<smem>>, %arg2: memref<64x128xf32, #tpu.memory_space<vmem>>, %arg3: memref<8x128xbf16, #tpu.memory_space<vmem>>, %arg4: memref<1x1xf32, #tpu.memory_space<smem>>) attributes {dimension_semantics = [], scalar_prefetch = 0 : i64, scratch_operands = 0 : i64, tpu.core_type = #tpu.core_type<tc>} {
    %cst = arith.constant 0.000000e+00 : f32
    %0 = vector.broadcast %cst : f32 to vector<8x128xf32>
    %c0 = arith.constant 0 : index
    %c0_0 = arith.constant 0 : index
    %1 = vector.load %arg2[%c0, %c0_0] : memref<64x128xf32, #tpu.memory_space<vmem>>, vector<64x128xf32>
    %2 = arith.mulf %1, %1 : vector<64x128xf32>
    %3 = vector.shape_cast %2 : vector<64x128xf32> to vector<8x8x128xf32>
    %cst_1 = arith.constant dense<0.000000e+00> : vector<8x128xf32>
    %4 = vector.multi_reduction <add>, %3, %cst_1 [0] : vector<8x8x128xf32> to vector<8x128xf32>
    %5 = arith.addf %0, %4 : vector<8x128xf32>
    %c0_2 = arith.constant 0 : index
    %c0_3 = arith.constant 0 : index
    %6 = vector.load %arg3[%c0_2, %c0_3] : memref<8x128xbf16, #tpu.memory_space<vmem>>, vector<8x128xbf16>
    %7 = arith.extf %6 : vector<8x128xbf16> to vector<8x128xf32>
    %8 = arith.mulf %7, %7 : vector<8x128xf32>
    %9 = vector.shape_cast %8 : vector<8x128xf32> to vector<1x8x128xf32>
    %cst_4 = arith.constant dense<0.000000e+00> : vector<8x128xf32>
    %10 = vector.multi_reduction <add>, %9, %cst_4 [0] : vector<1x8x128xf32> to vector<8x128xf32>
    %11 = arith.addf %5, %10 : vector<8x128xf32>
    %12 = vector.shape_cast %11 : vector<8x128xf32> to vector<1x8x128xf32>
    %cst_5 = arith.constant dense<0.000000e+00> : vector<1xf32>
    %13 = vector.multi_reduction <add>, %12, %cst_5 [1, 2] : vector<1x8x128xf32> to vector<1xf32>
    %14 = vector.shape_cast %13 : vector<1xf32> to vector<1x1x1xf32>
    %15 = vector.extract %14[0, 0, 0] : f32 from vector<1x1x1xf32>
    %c0_6 = arith.constant 0 : index
    %c0_7 = arith.constant 0 : index
    %16 = memref.load %arg1[%c0_6, %c0_7] : memref<1x1xf32, #tpu.memory_space<smem>>
    %17 = arith.addf %15, %16 : f32
    %c0_8 = arith.constant 0 : index
    %c0_9 = arith.constant 0 : index
    %18 = memref.load %arg0[%c0_8, %c0_9] : memref<1x1xf32, #tpu.memory_space<smem>>
    %cst_10 = arith.constant 5.000000e-06 : f32
    %19 = arith.mulf %cst_10, %17 : f32
    %20 = arith.addf %18, %19 : f32
    %c0_11 = arith.constant 0 : index
    %c0_12 = arith.constant 0 : index
    %21 = memref.load %arg4[%c0_11, %c0_12] : memref<1x1xf32, #tpu.memory_space<smem>>
    memref.store %20, %arg4[%c0_11, %c0_12] : memref<1x1xf32, #tpu.memory_space<smem>>
    return
  }
}

</mosaic_0001>

<bundles_post_ra>
// kernel: loss_with_l2_regularization.1
= control target key start
LH: loop header
LB: loop body
LE: loop exit
PB: predicated region body
PF: predicated region fallthrough
CT: control target
= control target key end

     0   :  { %s153_s0 = inlined_call_operand.<no memory space> [shape: f32[1,1], index: 0, kind: input, shape index: {}]   ;;  %s154_s1 = inlined_call_operand.<no memory space> [shape: f32[1,1], index: 1, kind: input, shape index: {}]   ;;  %s155_s2 = inlined_call_operand.vmem [shape: f32[64,128], index: 2, kind: input, shape index: {}]   ;;  %s156_s3 = inlined_call_operand.vmem [shape: bf16[8,128], index: 3, kind: input, shape index: {}]   ;;  %s157_s4 = inlined_call_operand.hbm [shape: f32[1,1], index: 4, kind: output, shape index: {}]  }
   0x1   :  { %v20_v0 = vld [vmem:[%s155_s2] sm:$0xff]  ;;  %v21_v1 = vld [vmem:[%s155_s2 + $0x8] sm:$0xff]  ;;  %v22_v2 = vld [vmem:[%s155_s2 + $0x10] sm:$0xff] }
   0x2   :  { %v23_v3 = vld [vmem:[%s155_s2 + $0x18] sm:$0xff]  ;;  %v28_v4 = vmul.f32 %v20_v0, %v20_v0  ;;  %v29_v5 = vmul.f32 %v21_v1, %v21_v1  ;;  %v30_v6 = vmul.f32 %v22_v2, %v22_v2  ;;  %v24_v7 = vld [vmem:[%s155_s2 + $0x20] sm:$0xff] }
   0x3   :  { %v31_v8 = vmul.f32 %v23_v3, %v23_v3 }
   0x4   :  { %v36_v9 = vadd.f32 %v29_v5, %v28_v4 }
   0x5   :  { %11 = vsyncpa [#allocation5], 0  ;;  %v25_v10 = vld [vmem:[%s155_s2 + $0x28] sm:$0xff]  ;;  %v32_v11 = vmul.f32 %v24_v7, %v24_v7  ;;  %v26_v13 = vld [vmem:[%s155_s2 + $0x30] sm:$0xff]  ;;  %s91_s13 = smov [#allocation4]  }
   0x6   :  { %v37_v12 = vadd.f32 %v36_v9, %v30_v6  ;;  %v44_v14 = vld [vmem:[%s156_s3] sm:$0xf]  ;;  %v33_v15 = vmul.f32 %v25_v10, %v25_v10  ;;  %v27_v17 = vld [vmem:[%s155_s2 + $0x38] sm:$0xff]  ;;  %v34_v18 = vmul.f32 %v26_v13, %v26_v13 }
   0x7   :  { %v45_v20 = vunpack.c.l.bf16 %v44_v14  ;;  %v35_v21 = vmul.f32 %v27_v17, %v27_v17 }
   0x8   :  { %v38_v16 = vadd.f32 %v37_v12, %v31_v8 }
   0x9   :  { %v46_v24 = vmul.f32 %v45_v20, %v45_v20 }
   0xa   :  { %v39_v19 = vadd.f32 %v38_v16, %v32_v11 }
   0xc   :  { %v40_v22 = vadd.f32 %v39_v19, %v33_v15 }
   0xe   :  { %v41_v23 = vadd.f32 %v40_v22, %v34_v18 }
  0x10   :  { %v42_v25 = vadd.f32 %v41_v23, %v35_v21 }
  0x12   :  { %v48_v26 = vadd.f32 %v46_v24, %v42_v25 }
  0x14   :  { %49 = vadd.xlane.f32.xlu0 %v48_v26 }
  0x9d   :  { %v50_v27 = vpop.xlane.xlu0 %49 }
  0x9e   :  { %v51_v28 = vrot.slane %v50_v27, 4 }
  0xa0   :  { %v52_v29 = vadd.f32 %v51_v28, %v50_v27 }
  0xa2   :  { %v53_v30 = vrot.slane %v52_v29, 2 }
  0xa4   :  { %v54_v31 = vadd.f32 %v53_v30, %v52_v29 }
  0xa6   :  { %v55_v32 = vrot.slane %v54_v31, 1 }
  0xa8   :  { %v56_v33 = vadd.f32 %v55_v32, %v54_v31 }
  0xaa   :  { %78 = vpush %v56_v33 }
  0xdb   :  { %s79_s3 = spop %78 }
  0xdc   :  { %s59_s8 = sadd.f32 %s79_s3, %s154_s1 }
  0xde   :  { %s61_s9 = smul.f32 5e-06, %s59_s8 }
  0xe0   :  { %s62_s12 = sadd.f32 %s61_s9, %s153_s0 }
  0xe2   :  { %64 = sst [smem:[#allocation4]] %s62_s12 }
  0xe3   :  { %72 = dma.smem_to_hbm %s91_s13, 16, %s157_s4, [#allocation5]  }
  0xe4   :  { %89 = dma.done.wait [#allocation5], 16  }
  0xe5   :  { %90 = vsyncadd [#allocation5], 4294967280 }
  0xe6   :  { %76 = sfence }
  0xe7   :  { %77 = vsyncpa [#allocation5], 1 }

</bundles_post_ra>
